<compile_context>
chip_gen: v7x
topology: tpu7x:2x2x1
jax: 0.10.0
libtpu: 0.0.40
codegen_flags: <defaults>
</compile_context>

<pallas_src>
import functools

import jax
import jax.numpy as jnp
from jax.experimental import pallas as pl
from jax.experimental.pallas import tpu as pltpu


def _round_up(a: int, b: int) -> int:
    return ((a + b - 1) // b) * b


def _lane_group(feat: int) -> int:
    """How many original rows are packed into one 128-lane packed row."""
    if 0 < feat <= 128 and 128 % feat == 0:
        return 128 // feat
    # TODO(synk): when 128 % feat != 0 the packed last dim is not a multiple of
    # 128, so stores fall back to masked partial stores (vst.msk).
    return 1


def _row_mask_kernel(d_ref, r_ref, expand_ref, o_ref, *, mask_prob):
    """Zero whole (original) rows of the lane-packed block.

    d_ref:      (Tp, G*feat)  G original rows packed along the lane axis.
    r_ref:      (Tp, G)       one uniform draw per original row.
    expand_ref: (G, G*feat)   constant one-hot-per-group expansion matrix.
    """
    # keep_g[i, g] = 1.0 iff original row survives (torch: rand < p ==> zero).
    keep_g = (r_ref[...] >= jnp.float32(mask_prob)).astype(jnp.float32)
    # Expand each group's keep bit across its `feat` lanes on the MXU.
    keep_full = jnp.dot(keep_g, expand_ref[...],
                        preferred_element_type=jnp.float32)
    o_ref[...] = d_ref[...] * keep_full.astype(o_ref.dtype)


def _choose_tile(rows_g: int, g: int, feat: int, itemsize: int,
                 tile_rows: int) -> int:
    """Pick a row-tile (in original rows, multiple of 8*g)."""
    align = 8 * g                               # packed block: 8 sublanes min
    rows_al = _round_up(max(rows_g, 1), align)
    # Cap a single data block at ~2 MiB so double-buffered in+out blocks stay
    # far below v5e's 16 MiB default scoped-VMEM limit (and v7x's 64 MiB VMEM).
    bytes_per_row = max(feat * itemsize, 1)
    cap = max(align, ((2 * 1024 * 1024) // bytes_per_row) // align * align)
    tile = min(_round_up(max(tile_rows, align), align), cap, rows_al)
    # Keep >= 2 tiles when there is enough work, so the "parallel" grid axis
    # can shard across v7x's two TensorCores.
    if rows_al > align and tile >= rows_al:
        tile = max(align, _round_up((rows_al + 1) // 2, align))
    return tile


def _mask_rows_pallas(data, rand, *, mask_prob, tile_rows):
    """Row-wise zero-masking of one 2-D tensor with its own grid."""
    n, feat = data.shape
    if n == 0 or feat == 0:
        return data

    g = _lane_group(feat)
    itemsize = jnp.dtype(data.dtype).itemsize

    # Pad rows only to a multiple of g (needed for the packing reshape).
    n_g = _round_up(n, g)
    if n_g != n:
        data_p = jnp.pad(data, ((0, n_g - n), (0, 0)))
        rand_p = jnp.pad(rand, (0, n_g - n), constant_values=1.0)  # keep
    else:
        data_p, rand_p = data, rand

    packed = data_p.reshape(n_g // g, g * feat)        # contiguous -> free
    rand_pk = rand_p.reshape(n_g // g, g)

    tile = _choose_tile(n_g, g, feat, itemsize, tile_rows)
    tile_p = tile // g
    num_tiles = pl.cdiv(n_g // g, tile_p)

    # Constant (G, G*feat) one-hot-per-group expansion matrix.
    col_group = jnp.arange(g * feat, dtype=jnp.int32) // feat
    expand = (col_group[None, :] ==
              jnp.arange(g, dtype=jnp.int32)[:, None]).astype(jnp.float32)

    kernel = functools.partial(_row_mask_kernel, mask_prob=float(mask_prob))

    out_packed = pl.pallas_call(
        kernel,
        grid=(num_tiles,),
        out_shape=jax.ShapeDtypeStruct(packed.shape, packed.dtype),
        in_specs=[
            pl.BlockSpec((tile_p, g * feat), lambda i: (i, 0)),   # data (packed)
            pl.BlockSpec((tile_p, g), lambda i: (i, 0)),          # per-row rand
            pl.BlockSpec((g, g * feat), lambda i: (0, 0)),        # expand const
        ],
        out_specs=pl.BlockSpec((tile_p, g * feat), lambda i: (i, 0)),
        input_output_aliases={0: 0},   # mask in place on the packed buffer
        compiler_params=pltpu.CompilerParams(
            dimension_semantics=("parallel",)),
    )(packed, rand_pk, expand)

    out = out_packed.reshape(n_g, feat)
    if n_g != n:
        out = out[:n]   # only in the rare non-G-aligned remainder case
    return out


@functools.partial(jax.jit, static_argnames=("mask_prob", "tile_rows"))
def graph_attr_masking_augmentation(x, edge_attr, key, *, mask_prob,
                                    tile_rows=8192):
    """JAX/Pallas equivalent of GraphAttrMaskingAugmentation.forward.

    Returns (masked_x, masked_edge_attr); node rows and edge rows are
    independently zeroed with probability `mask_prob`.  `key` is a traced
    jax.random key so the mask pattern changes every call.
    """
    num_nodes = x.shape[0]
    num_edges = edge_attr.shape[0]

    # One uniform per row, exactly like torch.rand(num_nodes)/rand(num_edges).
    k_nodes, k_edges = jax.random.split(key)
    rand_nodes = jax.random.uniform(k_nodes, (num_nodes,), dtype=jnp.float32)
    rand_edges = jax.random.uniform(k_edges, (num_edges,), dtype=jnp.float32)

    x_out = _mask_rows_pallas(x, rand_nodes, mask_prob=mask_prob,
                              tile_rows=tile_rows)
    e_out = _mask_rows_pallas(edge_attr, rand_edges, mask_prob=mask_prob,
                              tile_rows=tile_rows)
    return x_out, e_out


if __name__ == "__main__":
    root = jax.random.PRNGKey(0)
    k_x, k_e, k_mask = jax.random.split(root, 3)

    num_nodes, feat_dim = 16, 32
    num_edges, edge_dim = 48, 8      # decoupled row counts (edges != nodes)
    mask_prob = 0.3

    x = jax.random.normal(k_x, (num_nodes, feat_dim), dtype=jnp.float32)
    edge_attr = jax.random.normal(k_e, (num_edges, edge_dim), dtype=jnp.float32)

    x_out, e_out = graph_attr_masking_augmentation(
        x, edge_attr, k_mask, mask_prob=mask_prob)
    jax.block_until_ready((x_out, e_out))

    # Sanity: every row is either untouched or fully zero.
    def _check_rows(orig, out):
        row_zero = jnp.all(out == 0.0, axis=-1)
        row_same = jnp.all(out == orig, axis=-1)
        assert bool(jnp.all(row_zero | row_same)), "rows must be kept or zeroed"

    _check_rows(x, x_out)
    _check_rows(edge_attr, e_out)

    # Exact reference: reproduce the same per-row uniforms the wrapper drew.
    k_nodes, k_edges = jax.random.split(k_mask)
    rn = jax.random.uniform(k_nodes, (num_nodes,), dtype=jnp.float32)
    re = jax.random.uniform(k_edges, (num_edges,), dtype=jnp.float32)
    x_ref = jnp.where((rn >= mask_prob)[:, None], x, 0.0)
    e_ref = jnp.where((re >= mask_prob)[:, None], edge_attr, 0.0)
    assert bool(jnp.all(x_out == x_ref)), "node masking mismatch vs reference"
    assert bool(jnp.all(e_out == e_ref)), "edge masking mismatch vs reference"

    print("KERNEL_OK")
</pallas_src>

<mosaic_0001>
module attributes {stable_mosaic.version = 11 : i64} {
  func.func @_row_mask_kernel(%arg0: i32, %arg1: memref<8x128xf32, #tpu.memory_space<vmem>>, %arg2: memref<8x16xf32, #tpu.memory_space<vmem>>, %arg3: memref<16x128xf32, #tpu.memory_space<vmem>>, %arg4: memref<8x128xf32, #tpu.memory_space<vmem>>) attributes {dimension_semantics = [#tpu.dimension_semantics<parallel>], iteration_bounds = array<i64: 1>, scalar_prefetch = 0 : i64, scratch_operands = 0 : i64, tpu.core_type = #tpu.core_type<tc>, window_params = [{transform_indices = @transform_0, window_bounds = array<i64: 8, 128>}, {transform_indices = @transform_1, window_bounds = array<i64: 8, 16>}, {pipeline_mode = #tpu.pipeline_mode<synchronous>, transform_indices = @transform_2, window_bounds = array<i64: 16, 128>}, {transform_indices = @transform_3, window_bounds = array<i64: 8, 128>}]} {
    %c0 = arith.constant 0 : index
    %c0_0 = arith.constant 0 : index
    %0 = vector.load %arg2[%c0, %c0_0] : memref<8x16xf32, #tpu.memory_space<vmem>>, vector<8x16xf32>
    %cst = arith.constant 3.000000e-01 : f32
    %1 = vector.broadcast %cst : f32 to vector<8x16xf32>
    %2 = arith.cmpf oge, %0, %1 : vector<8x16xf32>
    %3 = arith.extui %2 : vector<8x16xi1> to vector<8x16xi32>
    %4 = arith.sitofp %3 : vector<8x16xi32> to vector<8x16xf32>
    %c0_1 = arith.constant 0 : index
    %c0_2 = arith.constant 0 : index
    %5 = vector.load %arg3[%c0_1, %c0_2] : memref<16x128xf32, #tpu.memory_space<vmem>>, vector<16x128xf32>
    %cst_3 = arith.constant dense<0.000000e+00> : vector<8x128xf32>
    %6 = tpu.matmul %4, %5, %cst_3 {dimension_numbers = #tpu.dot_dimension_numbers<[1], [0], [0], [1], [0, 0, 1, 1], [], []>} : vector<8x16xf32>, vector<16x128xf32>, vector<8x128xf32> -> vector<8x128xf32>
    %c0_4 = arith.constant 0 : index
    %c0_5 = arith.constant 0 : index
    %7 = vector.load %arg1[%c0_4, %c0_5] : memref<8x128xf32, #tpu.memory_space<vmem>>, vector<8x128xf32>
    %8 = arith.mulf %7, %6 : vector<8x128xf32>
    %c0_6 = arith.constant 0 : index
    %c0_7 = arith.constant 0 : index
    %9 = vector.load %arg4[%c0_6, %c0_7] : memref<8x128xf32, #tpu.memory_space<vmem>>, vector<8x128xf32>
    tpu.vector_store %arg4[%c0_6, %c0_7], %8 {strides = array<i32>} : memref<8x128xf32, #tpu.memory_space<vmem>>, vector<8x128xf32>,
    return
  }
  func.func @transform_0(%arg0: i32) -> (i32, i32) {
    %c0_i32 = arith.constant 0 : i32
    %c0_i32_0 = arith.constant 0 : i32
    return %arg0, %c0_i32 : i32, i32
  }
  func.func @transform_1(%arg0: i32) -> (i32, i32) {
    %c0_i32 = arith.constant 0 : i32
    %c0_i32_0 = arith.constant 0 : i32
    return %arg0, %c0_i32 : i32, i32
  }
  func.func @transform_2(%arg0: i32) -> (i32, i32) {
    %c0_i32 = arith.constant 0 : i32
    %c0_i32_0 = arith.constant 0 : i32
    %c0_i32_1 = arith.constant 0 : i32
    return %c0_i32, %c0_i32_0 : i32, i32
  }
  func.func @transform_3(%arg0: i32) -> (i32, i32) {
    %c0_i32 = arith.constant 0 : i32
    %c0_i32_0 = arith.constant 0 : i32
    return %arg0, %c0_i32 : i32, i32
  }
}

module attributes {stable_mosaic.version = 11 : i64} {
  func.func @_row_mask_kernel(%arg0: i32, %arg1: memref<8x128xf32, #tpu.memory_space<vmem>>, %arg2: memref<8x4xf32, #tpu.memory_space<vmem>>, %arg3: memref<4x128xf32, #tpu.memory_space<vmem>>, %arg4: memref<8x128xf32, #tpu.memory_space<vmem>>) attributes {dimension_semantics = [#tpu.dimension_semantics<parallel>], iteration_bounds = array<i64: 1>, scalar_prefetch = 0 : i64, scratch_operands = 0 : i64, tpu.core_type = #tpu.core_type<tc>, window_params = [{transform_indices = @transform_0, window_bounds = array<i64: 8, 128>}, {transform_indices = @transform_1, window_bounds = array<i64: 8, 4>}, {pipeline_mode = #tpu.pipeline_mode<synchronous>, transform_indices = @transform_2, window_bounds = array<i64: 4, 128>}, {transform_indices = @transform_3, window_bounds = array<i64: 8, 128>}]} {
    %c0 = arith.constant 0 : index
    %c0_0 = arith.constant 0 : index
    %0 = vector.load %arg2[%c0, %c0_0] : memref<8x4xf32, #tpu.memory_space<vmem>>, vector<8x4xf32>
    %cst = arith.constant 3.000000e-01 : f32
    %1 = vector.broadcast %cst : f32 to vector<8x4xf32>
    %2 = arith.cmpf oge, %0, %1 : vector<8x4xf32>
    %3 = arith.extui %2 : vector<8x4xi1> to vector<8x4xi32>
    %4 = arith.sitofp %3 : vector<8x4xi32> to vector<8x4xf32>
    %c0_1 = arith.constant 0 : index
    %c0_2 = arith.constant 0 : index
    %5 = vector.load %arg3[%c0_1, %c0_2] : memref<4x128xf32, #tpu.memory_space<vmem>>, vector<4x128xf32>
    %cst_3 = arith.constant dense<0.000000e+00> : vector<8x128xf32>
    %6 = tpu.matmul %4, %5, %cst_3 {dimension_numbers = #tpu.dot_dimension_numbers<[1], [0], [0], [1], [0, 0, 1, 1], [], []>} : vector<8x4xf32>, vector<4x128xf32>, vector<8x128xf32> -> vector<8x128xf32>
    %c0_4 = arith.constant 0 : index
    %c0_5 = arith.constant 0 : index
    %7 = vector.load %arg1[%c0_4, %c0_5] : memref<8x128xf32, #tpu.memory_space<vmem>>, vector<8x128xf32>
    %8 = arith.mulf %7, %6 : vector<8x128xf32>
    %c0_6 = arith.constant 0 : index
    %c0_7 = arith.constant 0 : index
    %9 = vector.load %arg4[%c0_6, %c0_7] : memref<8x128xf32, #tpu.memory_space<vmem>>, vector<8x128xf32>
    tpu.vector_store %arg4[%c0_6, %c0_7], %8 {strides = array<i32>} : memref<8x128xf32, #tpu.memory_space<vmem>>, vector<8x128xf32>,
    return
  }
  func.func @transform_0(%arg0: i32) -> (i32, i32) {
    %c0_i32 = arith.constant 0 : i32
    %c0_i32_0 = arith.constant 0 : i32
    return %arg0, %c0_i32 : i32, i32
  }
  func.func @transform_1(%arg0: i32) -> (i32, i32) {
    %c0_i32 = arith.constant 0 : i32
    %c0_i32_0 = arith.constant 0 : i32
    return %arg0, %c0_i32 : i32, i32
  }
  func.func @transform_2(%arg0: i32) -> (i32, i32) {
    %c0_i32 = arith.constant 0 : i32
    %c0_i32_0 = arith.constant 0 : i32
    %c0_i32_1 = arith.constant 0 : i32
    return %c0_i32, %c0_i32_0 : i32, i32
  }
  func.func @transform_3(%arg0: i32) -> (i32, i32) {
    %c0_i32 = arith.constant 0 : i32
    %c0_i32_0 = arith.constant 0 : i32
    return %arg0, %c0_i32 : i32, i32
  }
}

</mosaic_0001>

<bundles_post_ra>
// kernel: graph_attr_masking_augmentation.4
= control target key start
LH: loop header
LB: loop body
LE: loop exit
PB: predicated region body
PF: predicated region fallthrough
CT: control target
= control target key end

     0   :  { %vm23_vm0 = vcmask 1043456   ;;  %v151_v2 = vmov 0.0   ;;  %vm152_vm1 = vmmov 0   ;;  %vm19_vm3 = vcmask 31744   ;;  %s185_s0 = inlined_call_operand.vmem [shape: f32[4,128], index: 0, kind: input, shape index: {}, may-alias: {0,3}]   ;;  %s186_s1 = inlined_call_operand.vmem [shape: f32[4,4], index: 1, kind: input, shape index: {}]   ;;  %s187_s2 = inlined_call_operand.vmem [shape: f32[4,128], index: 2, kind: input, shape index: {}]   ;;  %s188_s3 = inlined_call_operand.vmem [shape: f32[4,128], index: 3, kind: output, shape index: {}, may-alias: {0,3}]  }
   0x1   :  { %v18_v0 = vld [vmem:[%s187_s2] sm:$0xf]  ;;  %144 = vmatprep.subr.mxu0 %v151_v2  ;;  %146 = vmatprep.mubr.msk.f32.mxu0 %vm152_vm1, %v151_v2 }
   0x2   :  { %v14_v1 = vld [vmem:[%s186_s1] sm:$0xff]  ;;  %145 = vmatpush3.msk.msra.mxu0 %vm23_vm0, %v18_v0 }
   0x3   :  { %vm15_vm2 = vcmp.ge.f32.partialorder %v14_v1, 0.3  ;;  %v97_v4 = vld [vmem:[%s185_s0] sm:$0xff] }
   0x4   :  { %v139_v3 = vsel %vm15_vm2, 1.0, %v151_v2 }
   0x5   :  { %147 = vmatmul.mubr.msk.f32.vlgmr.msra.gmra.mrb[0].mxu0 %vm19_vm3, %v139_v3 }
  0xd8   :  { %v93_v5 = vpop.f32.mrb[0].mxu0 }
  0xd9   :  { %v98_v6 = vmul.f32 %v97_v4, %v93_v5  ;;  %v148_v7 = vpop.f32.mrb[1].mxu0 }
  0xdb   :  { %99 = vst [vmem:[#allocation2] sm:$0xff] %v98_v6 }
  0xe2   :  { %v117_v8 = vld [vmem:[#allocation2] sm:$0xf] }
  0xe3   :  { %118 = vst [vmem:[%s188_s3] sm:$0xf] %v117_v8 }

// kernel: graph_attr_masking_augmentation.5
= control target key start
LH: loop header
LB: loop body
LE: loop exit
PB: predicated region body
PF: predicated region fallthrough
CT: control target
= control target key end

     0   :  { %v154_v3 = vmov 0.0|0.0   ;;  %vm155_vm1 = vmmov 0   ;;  %v156_v5 = vmov 0.0   ;;  %vm20_vm2 = vcmask 130048   ;;  %s192_s0 = inlined_call_operand.vmem [shape: f32[3,128], index: 0, kind: input, shape index: {}, may-alias: {0,3}]   ;;  %s193_s1 = inlined_call_operand.vmem [shape: f32[3,16], index: 1, kind: input, shape index: {}]   ;;  %s194_s2 = inlined_call_operand.vmem [shape: f32[16,128], index: 2, kind: input, shape index: {}]   ;;  %s195_s3 = inlined_call_operand.vmem [shape: f32[3,128], index: 3, kind: output, shape index: {}, may-alias: {0,3}]  }
   0x1   :  { %v18_v0 = vld [vmem:[%s194_s2] sm:$0xff]  ;;  %v19_v1 = vld [vmem:[%s194_s2 + $0x8] sm:$0xff]  ;;  %148 = vmatprep.subr.bf16.mxu0 %v154_v3  ;;  %145 = vmatprep.mubr.msk.f32.mxu0 %vm155_vm1, %v156_v5 }
   0x2   :  { %v14_v2 = vld [vmem:[%s193_s1] sm:$0xff]  ;;  %v149_v4 = vpack.c.bf16 %v19_v1, %v18_v0 }
   0x3   :  { %vm15_vm0 = vcmp.ge.f32.partialorder %v14_v2, 0.3  ;;  %v94_v7 = vld [vmem:[%s192_s0] sm:$0xff] }
   0x4   :  { %150 = vmatpush3.bf16.msra.mxu0 %v149_v4  ;;  %v136_v6 = vsel %vm15_vm0, 1.0, %v156_v5 }
   0x7   :  { %146 = vmatmul.mubr.msk.f32.vlgmr.msra.gmra.mrb[0].mxu0 %vm20_vm2, %v136_v6 }
  0xda   :  { %v90_v8 = vpop.f32.mrb[0].mxu0 }
  0xdb   :  { %v95_v9 = vmul.f32 %v94_v7, %v90_v8  ;;  %v147_v10 = vpop.f32.mrb[1].mxu0 }
  0xdd   :  { %96 = vst [vmem:[#allocation2] sm:$0xff] %v95_v9 }
  0xe4   :  { %v114_v11 = vld [vmem:[#allocation2] sm:$0xf] }
  0xe5   :  { %115 = vst [vmem:[%s195_s3] sm:$0xf] %v114_v11 }

</bundles_post_ra>
